<compile_context>
chip_gen: v7x
topology: tpu7x:2x2x1
jax: 0.10.0
libtpu: 0.0.40
codegen_flags: <defaults>
</compile_context>

<pallas_src>
import jax
import jax.numpy as jnp
import numpy as np
from jax import lax
from jax.experimental import pallas as pl
from jax.experimental.pallas import tpu as pltpu

_NEG_INF = float("-inf")


def _dot_nt(a, b):
    """a @ b.T without materializing the transpose (contract last dims, MXU)."""
    return lax.dot_general(
        a, b,
        dimension_numbers=(((1,), (1,)), ((), ())),
        preferred_element_type=jnp.float32,
    )


def _eye_f32(n):
    r = lax.broadcasted_iota(jnp.int32, (n, n), 0)
    c = lax.broadcasted_iota(jnp.int32, (n, n), 1)
    return (r == c).astype(jnp.float32)


def _row_max_onehot(s):
    """Row max (keepdims) + one-hot of the FIRST argmax along axis=1."""
    n, m = s.shape
    rowmax = jnp.max(s, axis=1, keepdims=True)                       # (n, 1)
    col = lax.broadcasted_iota(jnp.int32, (n, m), 1)                 # (n, m)
    idx = jnp.min(jnp.where(s == rowmax, col, jnp.int32(m)),
                  axis=1, keepdims=True)                             # (n, 1)
    return rowmax, (col == idx).astype(jnp.float32)


def _col_max_onehot(s):
    """Col max (keepdims) + one-hot of the FIRST argmax along axis=0."""
    n, m = s.shape
    colmax = jnp.max(s, axis=0, keepdims=True)                       # (1, m)
    row = lax.broadcasted_iota(jnp.int32, (n, m), 0)                 # (n, m)
    idx = jnp.min(jnp.where(s == colmax, row, jnp.int32(n)),
                  axis=0, keepdims=True)                             # (1, m)
    return colmax, (row == idx).astype(jnp.float32)


def _factorized_importance_kernel(mn_ref, rn_ref, mc_ref, rc_ref,
                                  mi_ref, ri_ref):
    # Batch dim is squeezed by the BlockSpecs: refs are plain 2-D tiles.
    mn = mn_ref[...]   # (n1, d)  match nodes (this batch element)
    rn = rn_ref[...]   # (n2, d)  ref nodes   (this batch element)
    mc = mc_ref[...]   # (c1, d)  match clusters (shared parameter, resident)
    rc = rc_ref[...]   # (c2, d)  ref clusters   (shared parameter, resident)
    c2 = rc.shape[0]

    # Pairwise dot-product similarities (MXU, transpose-free).
    # s1t[c, i] == S1[i, c];  s3[j, k] == S3[j, k].
    # NOTE: default MXU precision; near-tie argmaxes may differ from a strict
    # f32 reference (fine at the 2e-2 test tolerance).
    s1t = _dot_nt(mc, mn)   # (c1, n1)
    s2 = _dot_nt(mc, rc)    # (c1, c2)   single pass, shared by both paths
    s3 = _dot_nt(rc, rn)    # (c2, n2)

    # Shared maxima.
    mn2mc_row = jnp.max(s1t, axis=0, keepdims=True)   # (1, n1) S1.max(1)
    mc2mn_col = jnp.max(s1t, axis=1, keepdims=True)   # (c1, 1) S1.max(0)
    rn2rc_row = jnp.max(s3, axis=0, keepdims=True)    # (1, n2) S3.max(0)
    rc2rn_col = jnp.max(s3, axis=1, keepdims=True)    # (c2, 1) S3.max(1)

    # Exact first-occurrence argmax one-hots only on the tiny S2.
    mc2rc_col, oh_mc2rc = _row_max_onehot(s2)         # (c1, 1), (c1, c2)
    rc2mc_row, oh_rc2mc = _col_max_onehot(s2)         # (1, c2), (c1, c2)

    # ---- match path: mn -> mc -> rc -> rn -------------------------------
    # f[c] = mc2rc_val[c] * rc2rn_val[mc2rc_ind[c]]
    f_col = mc2rc_col * jnp.dot(oh_mc2rc, rc2rn_col,
                                preferred_element_type=jnp.float32)  # (c1, 1)
    # match_imp[i] = mn2mc_val[i] * f[argmax_c S1[i, :]]   (masked select;
    # differs from torch only on exact float ties; NaN rows become -inf*max).
    mi_ref[...] = mn2mc_row * jnp.max(
        jnp.where(s1t == mn2mc_row, f_col, _NEG_INF), axis=0, keepdims=True)

    # ---- ref path: rn -> rc -> mc -> mn ----------------------------------
    # gathered[j] = mc2mn_val[rc2mc_ind[j]]  (tiny (c1,c2) broadcast + reduce)
    gathered_row = jnp.sum(oh_rc2mc * mc2mn_col, axis=0, keepdims=True)  # (1, c2)
    g_row = rc2mc_row * gathered_row                                     # (1, c2)
    # (1,c2) -> (c2,1) via a tiny identity mat-vec on the MXU: avoids a
    # lane->sublane relayout on the VPU/XLU path.
    g_col = _dot_nt(_eye_f32(c2), g_row)                                 # (c2, 1)
    # ref_imp[k] = rn2rc_val[k] * g[argmax_j S3[:, k]]   (masked select)
    ri_ref[...] = rn2rc_row * jnp.max(
        jnp.where(s3 == rn2rc_row, g_col, _NEG_INF), axis=0, keepdims=True)


@jax.jit
def factorized_importance_batched(match_nodes, ref_nodes,
                                  match_cluster, ref_cluster):
    """Batched pairs: nodes are (B, n, d); cluster params (c, d) are shared.

    Returns (B, n1, 1), (B, n2, 1).
    """
    B, n1, d = match_nodes.shape
    _, n2, d2 = ref_nodes.shape
    assert d == d2
    c1 = match_cluster.shape[0]
    c2 = ref_cluster.shape[0]

    flops = B * (2 * d * (n1 * c1 + c1 * c2 + c2 * n2) + 2 * c1 * c2)
    bytes_accessed = 4 * (B * (n1 + n2) * d + (c1 + c2) * d + B * (n1 + n2))

    mi_rows, ri_rows = pl.pallas_call(
        _factorized_importance_kernel,
        out_shape=(
            jax.ShapeDtypeStruct((B, 1, n1), jnp.float32),   # lane-dense rows
            jax.ShapeDtypeStruct((B, 1, n2), jnp.float32),
        ),
        grid=(B,),
        in_specs=[
            # Per-pair node blocks (batch dim squeezed).
            pl.BlockSpec((None, n1, d), lambda b: (b, 0, 0)),
            pl.BlockSpec((None, n2, d), lambda b: (b, 0, 0)),
            # Cluster parameters: same block for every grid step -> resident.
            pl.BlockSpec((c1, d), lambda b: (0, 0)),
            pl.BlockSpec((c2, d), lambda b: (0, 0)),
        ],
        out_specs=(
            pl.BlockSpec((None, 1, n1), lambda b: (b, 0, 0)),
            pl.BlockSpec((None, 1, n2), lambda b: (b, 0, 0)),
        ),
        compiler_params=pltpu.CompilerParams(
            dimension_semantics=("parallel",)),
        cost_estimate=pl.CostEstimate(
            flops=flops, transcendentals=0, bytes_accessed=bytes_accessed),
    )(match_nodes, ref_nodes, match_cluster, ref_cluster)

    # (B,1,n) -> (B,n,1): pure metadata reshape (same flat order).
    return mi_rows.reshape(B, n1, 1), ri_rows.reshape(B, n2, 1)


def factorized_importance(match_nodes, ref_nodes, match_cluster, ref_cluster):
    """Single-pair module forward: (n1,d),(n2,d) -> (n1,1),(n2,1)."""
    mi, ri = factorized_importance_batched(
        match_nodes[None], ref_nodes[None], match_cluster, ref_cluster)
    return mi[0], ri[0]


def _reference(match_nodes, ref_nodes, match_cluster, ref_cluster):
    """Pure-JAX re-implementation of the PyTorch forward (verification)."""
    hp = jax.lax.Precision.HIGHEST
    s1 = jnp.dot(match_nodes, match_cluster.T, precision=hp)
    s2 = jnp.dot(match_cluster, ref_cluster.T, precision=hp)
    s3 = jnp.dot(ref_cluster, ref_nodes.T, precision=hp)

    mn2mc_val, mn2mc_ind = s1.max(1), s1.argmax(1)
    mc2mn_val = s1.max(0)
    mc2rc_val, mc2rc_ind = s2.max(1), s2.argmax(1)
    rc2mc_val, rc2mc_ind = s2.max(0), s2.argmax(0)
    rc2rn_val = s3.max(1)
    rn2rc_val, rn2rc_ind = s3.max(0), s3.argmax(0)

    match_imp = mn2mc_val * mc2rc_val[mn2mc_ind] * rc2rn_val[mc2rc_ind[mn2mc_ind]]
    ref_imp = rn2rc_val * rc2mc_val[rn2rc_ind] * mc2mn_val[rc2mc_ind[rn2rc_ind]]
    return match_imp[:, None], ref_imp[:, None]


if __name__ == "__main__":
    # Small, module-consistent shapes.
    n1, n2 = 16, 12          # number of match / ref nodes
    d = 32                   # embedding_dim
    c1, c2 = 8, 6            # num_clusters / ref_num_clusters
    B = 3                    # batch of (match, ref) pairs for the grid path

    key = jax.random.PRNGKey(0)
    k_mn, k_rn, k_mc, k_rc, k_bmn, k_brn = jax.random.split(key, 6)
    match_nodes = jax.random.normal(k_mn, (n1, d), dtype=jnp.float32)
    ref_nodes = jax.random.normal(k_rn, (n2, d), dtype=jnp.float32)
    # Deterministic "parameters" (nn.Parameter(torch.randn(...)) equivalents).
    match_cluster = jax.random.normal(k_mc, (c1, d), dtype=jnp.float32)
    ref_cluster = jax.random.normal(k_rc, (c2, d), dtype=jnp.float32)

    # ---- single pair (module forward signature) -------------------------
    match_imp, ref_imp = factorized_importance(
        match_nodes, ref_nodes, match_cluster, ref_cluster)
    jax.block_until_ready((match_imp, ref_imp))

    ref_match, ref_ref = _reference(
        match_nodes, ref_nodes, match_cluster, ref_cluster)
    np.testing.assert_allclose(np.asarray(match_imp), np.asarray(ref_match),
                               rtol=2e-2, atol=2e-2)
    np.testing.assert_allclose(np.asarray(ref_imp), np.asarray(ref_ref),
                               rtol=2e-2, atol=2e-2)
    assert match_imp.shape == (n1, 1) and ref_imp.shape == (n2, 1)

    # ---- batched pairs: one parallel grid step per pair ------------------
    bmn = jax.random.normal(k_bmn, (B, n1, d), dtype=jnp.float32)
    brn = jax.random.normal(k_brn, (B, n2, d), dtype=jnp.float32)
    bmi, bri = factorized_importance_batched(bmn, brn, match_cluster, ref_cluster)
    jax.block_until_ready((bmi, bri))
    assert bmi.shape == (B, n1, 1) and bri.shape == (B, n2, 1)
    for b in range(B):
        rm, rr = _reference(bmn[b], brn[b], match_cluster, ref_cluster)
        np.testing.assert_allclose(np.asarray(bmi[b]), np.asarray(rm),
                                   rtol=2e-2, atol=2e-2)
        np.testing.assert_allclose(np.asarray(bri[b]), np.asarray(rr),
                                   rtol=2e-2, atol=2e-2)

    print("KERNEL_OK")
</pallas_src>

<mosaic_0001>
module attributes {stable_mosaic.version = 11 : i64} {
  func.func @_factorized_importance_kernel(%arg0: i32, %arg1: memref<1x16x32xf32, #tpu.memory_space<vmem>>, %arg2: memref<1x12x32xf32, #tpu.memory_space<vmem>>, %arg3: memref<8x32xf32, #tpu.memory_space<vmem>>, %arg4: memref<6x32xf32, #tpu.memory_space<vmem>>, %arg5: memref<1x1x16xf32, #tpu.memory_space<vmem>>, %arg6: memref<1x1x12xf32, #tpu.memory_space<vmem>>) attributes {dimension_semantics = [#tpu.dimension_semantics<parallel>], iteration_bounds = array<i64: 1>, scalar_prefetch = 0 : i64, scratch_operands = 0 : i64, tpu.core_type = #tpu.core_type<tc>, window_params = [{transform_indices = @transform_0, window_bounds = array<i64: 1, 16, 32>}, {transform_indices = @transform_1, window_bounds = array<i64: 1, 12, 32>}, {pipeline_mode = #tpu.pipeline_mode<synchronous>, transform_indices = @transform_2, window_bounds = array<i64: 8, 32>}, {pipeline_mode = #tpu.pipeline_mode<synchronous>, transform_indices = @transform_3, window_bounds = array<i64: 6, 32>}, {transform_indices = @transform_4, window_bounds = array<i64: 1, 1, 16>}, {transform_indices = @transform_5, window_bounds = array<i64: 1, 1, 12>}]} {
    %c0 = arith.constant 0 : index
    %c0_0 = arith.constant 0 : index
    %c0_1 = arith.constant 0 : index
    %0 = vector.load %arg1[%c0, %c0_0, %c0_1] : memref<1x16x32xf32, #tpu.memory_space<vmem>>, vector<1x16x32xf32>
    %1 = vector.shape_cast %0 : vector<1x16x32xf32> to vector<16x32xf32>
    %c0_2 = arith.constant 0 : index
    %c0_3 = arith.constant 0 : index
    %c0_4 = arith.constant 0 : index
    %2 = vector.load %arg2[%c0_2, %c0_3, %c0_4] : memref<1x12x32xf32, #tpu.memory_space<vmem>>, vector<1x12x32xf32>
    %3 = vector.shape_cast %2 : vector<1x12x32xf32> to vector<12x32xf32>
    %c0_5 = arith.constant 0 : index
    %c0_6 = arith.constant 0 : index
    %4 = vector.load %arg3[%c0_5, %c0_6] : memref<8x32xf32, #tpu.memory_space<vmem>>, vector<8x32xf32>
    %c0_7 = arith.constant 0 : index
    %c0_8 = arith.constant 0 : index
    %5 = vector.load %arg4[%c0_7, %c0_8] : memref<6x32xf32, #tpu.memory_space<vmem>>, vector<6x32xf32>
    %cst = arith.constant dense<0.000000e+00> : vector<8x16xf32>
    %6 = tpu.matmul %4, %1, %cst {dimension_numbers = #tpu.dot_dimension_numbers<[1], [1], [0], [0], [0, 0, 1, 0], [], []>} : vector<8x32xf32>, vector<16x32xf32>, vector<8x16xf32> -> vector<8x16xf32>
    %cst_9 = arith.constant dense<0.000000e+00> : vector<8x6xf32>
    %7 = tpu.matmul %4, %5, %cst_9 {dimension_numbers = #tpu.dot_dimension_numbers<[1], [1], [0], [0], [0, 0, 1, 0], [], []>} : vector<8x32xf32>, vector<6x32xf32>, vector<8x6xf32> -> vector<8x6xf32>
    %cst_10 = arith.constant dense<0.000000e+00> : vector<6x12xf32>
    %8 = tpu.matmul %5, %3, %cst_10 {dimension_numbers = #tpu.dot_dimension_numbers<[1], [1], [0], [0], [0, 0, 1, 0], [], []>} : vector<6x32xf32>, vector<12x32xf32>, vector<6x12xf32> -> vector<6x12xf32>
    %cst_11 = arith.constant dense<0xFF800000> : vector<16xf32>
    %9 = vector.multi_reduction <maximumf>, %6, %cst_11 [0] : vector<8x16xf32> to vector<16xf32>
    %10 = vector.shape_cast %9 : vector<16xf32> to vector<1x16xf32>
    %cst_12 = arith.constant dense<0xFF800000> : vector<8xf32>
    %11 = vector.multi_reduction <maximumf>, %6, %cst_12 [1] : vector<8x16xf32> to vector<8xf32>
    %12 = vector.shape_cast %11 : vector<8xf32> to vector<8x1xf32>
    %cst_13 = arith.constant dense<0xFF800000> : vector<12xf32>
    %13 = vector.multi_reduction <maximumf>, %8, %cst_13 [0] : vector<6x12xf32> to vector<12xf32>
    %14 = vector.shape_cast %13 : vector<12xf32> to vector<1x12xf32>
    %cst_14 = arith.constant dense<0xFF800000> : vector<6xf32>
    %15 = vector.multi_reduction <maximumf>, %8, %cst_14 [1] : vector<6x12xf32> to vector<6xf32>
    %16 = vector.shape_cast %15 : vector<6xf32> to vector<6x1xf32>
    %cst_15 = arith.constant dense<0xFF800000> : vector<8xf32>
    %17 = vector.multi_reduction <maximumf>, %7, %cst_15 [1] : vector<8x6xf32> to vector<8xf32>
    %18 = vector.shape_cast %17 : vector<8xf32> to vector<8x1xf32>
    %19 = tpu.iota {dimensions = array<i32: 1>} : vector<8x6xi32>
    %20 = vector.broadcast %18 : vector<8x1xf32> to vector<8x6xf32>
    %21 = arith.cmpf oeq, %7, %20 : vector<8x6xf32>
    %c6_i32 = arith.constant 6 : i32
    %22 = vector.broadcast %c6_i32 : i32 to vector<8x6xi32>
    %23 = arith.select %21, %19, %22 : vector<8x6xi1>, vector<8x6xi32>
    %cst_16 = arith.constant dense<2147483647> : vector<8xi32>
    %24 = vector.multi_reduction <minsi>, %23, %cst_16 [1] : vector<8x6xi32> to vector<8xi32>
    %25 = vector.shape_cast %24 : vector<8xi32> to vector<8x1xi32>
    %26 = vector.broadcast %25 : vector<8x1xi32> to vector<8x6xi32>
    %27 = arith.cmpi eq, %19, %26 : vector<8x6xi32>
    %28 = arith.extui %27 : vector<8x6xi1> to vector<8x6xi32>
    %29 = arith.sitofp %28 : vector<8x6xi32> to vector<8x6xf32>
    %cst_17 = arith.constant dense<0xFF800000> : vector<6xf32>
    %30 = vector.multi_reduction <maximumf>, %7, %cst_17 [0] : vector<8x6xf32> to vector<6xf32>
    %31 = vector.shape_cast %30 : vector<6xf32> to vector<1x6xf32>
    %32 = tpu.iota {dimensions = array<i32: 0>} : vector<8x6xi32>
    %33 = vector.broadcast %31 : vector<1x6xf32> to vector<8x6xf32>
    %34 = arith.cmpf oeq, %7, %33 : vector<8x6xf32>
    %c8_i32 = arith.constant 8 : i32
    %35 = vector.broadcast %c8_i32 : i32 to vector<8x6xi32>
    %36 = arith.select %34, %32, %35 : vector<8x6xi1>, vector<8x6xi32>
    %cst_18 = arith.constant dense<2147483647> : vector<6xi32>
    %37 = vector.multi_reduction <minsi>, %36, %cst_18 [0] : vector<8x6xi32> to vector<6xi32>
    %38 = vector.shape_cast %37 : vector<6xi32> to vector<1x6xi32>
    %39 = vector.broadcast %38 : vector<1x6xi32> to vector<8x6xi32>
    %40 = arith.cmpi eq, %32, %39 : vector<8x6xi32>
    %41 = arith.extui %40 : vector<8x6xi1> to vector<8x6xi32>
    %42 = arith.sitofp %41 : vector<8x6xi32> to vector<8x6xf32>
    %cst_19 = arith.constant dense<0.000000e+00> : vector<8x1xf32>
    %43 = tpu.matmul %29, %16, %cst_19 {dimension_numbers = #tpu.dot_dimension_numbers<[1], [0], [0], [1], [0, 0, 1, 1], [], []>} : vector<8x6xf32>, vector<6x1xf32>, vector<8x1xf32> -> vector<8x1xf32>
    %44 = arith.mulf %18, %43 : vector<8x1xf32>
    %45 = vector.broadcast %10 : vector<1x16xf32> to vector<8x16xf32>
    %46 = arith.cmpf oeq, %6, %45 : vector<8x16xf32>
    %cst_20 = arith.constant 0xFF800000 : f32
    %47 = vector.shape_cast %44 : vector<8x1xf32> to vector<8x1xf32>
    %48 = vector.broadcast %47 : vector<8x1xf32> to vector<8x16xf32>
    %49 = vector.broadcast %cst_20 : f32 to vector<8x16xf32>
    %50 = arith.select %46, %48, %49 : vector<8x16xi1>, vector<8x16xf32>
    %cst_21 = arith.constant dense<0xFF800000> : vector<16xf32>
    %51 = vector.multi_reduction <maximumf>, %50, %cst_21 [0] : vector<8x16xf32> to vector<16xf32>
    %52 = vector.shape_cast %51 : vector<16xf32> to vector<1x16xf32>
    %53 = arith.mulf %10, %52 : vector<1x16xf32>
    %c0_22 = arith.constant 0 : index
    %c0_23 = arith.constant 0 : index
    %c0_24 = arith.constant 0 : index
    %54 = vector.load %arg5[%c0_22, %c0_23, %c0_24] : memref<1x1x16xf32, #tpu.memory_space<vmem>>, vector<1x1x16xf32>
    %55 = vector.shape_cast %54 : vector<1x1x16xf32> to vector<1x16xf32>
    %56 = vector.shape_cast %53 : vector<1x16xf32> to vector<1x1x16xf32>
    tpu.vector_store %arg5[%c0_22, %c0_23, %c0_24], %56 {strides = array<i32>} : memref<1x1x16xf32, #tpu.memory_space<vmem>>, vector<1x1x16xf32>,
    %57 = vector.broadcast %12 : vector<8x1xf32> to vector<8x6xf32>
    %58 = arith.mulf %42, %57 : vector<8x6xf32>
    %cst_25 = arith.constant dense<0.000000e+00> : vector<6xf32>
    %59 = vector.multi_reduction <add>, %58, %cst_25 [0] : vector<8x6xf32> to vector<6xf32>
    %60 = vector.shape_cast %59 : vector<6xf32> to vector<1x6xf32>
    %61 = arith.mulf %31, %60 : vector<1x6xf32>
    %62 = tpu.iota {dimensions = array<i32: 0>} : vector<6x6xi32>
    %63 = tpu.iota {dimensions = array<i32: 1>} : vector<6x6xi32>
    %64 = arith.cmpi eq, %62, %63 : vector<6x6xi32>
    %65 = arith.extui %64 : vector<6x6xi1> to vector<6x6xi32>
    %66 = arith.sitofp %65 : vector<6x6xi32> to vector<6x6xf32>
    %cst_26 = arith.constant dense<0.000000e+00> : vector<6x1xf32>
    %67 = tpu.matmul %66, %61, %cst_26 {dimension_numbers = #tpu.dot_dimension_numbers<[1], [1], [0], [0], [0, 0, 1, 0], [], []>} : vector<6x6xf32>, vector<1x6xf32>, vector<6x1xf32> -> vector<6x1xf32>
    %68 = vector.broadcast %14 : vector<1x12xf32> to vector<6x12xf32>
    %69 = arith.cmpf oeq, %8, %68 : vector<6x12xf32>
    %cst_27 = arith.constant 0xFF800000 : f32
    %70 = vector.shape_cast %67 : vector<6x1xf32> to vector<6x1xf32>
    %71 = vector.broadcast %70 : vector<6x1xf32> to vector<6x12xf32>
    %72 = vector.broadcast %cst_27 : f32 to vector<6x12xf32>
    %73 = arith.select %69, %71, %72 : vector<6x12xi1>, vector<6x12xf32>
    %cst_28 = arith.constant dense<0xFF800000> : vector<12xf32>
    %74 = vector.multi_reduction <maximumf>, %73, %cst_28 [0] : vector<6x12xf32> to vector<12xf32>
    %75 = vector.shape_cast %74 : vector<12xf32> to vector<1x12xf32>
    %76 = arith.mulf %14, %75 : vector<1x12xf32>
    %c0_29 = arith.constant 0 : index
    %c0_30 = arith.constant 0 : index
    %c0_31 = arith.constant 0 : index
    %77 = vector.load %arg6[%c0_29, %c0_30, %c0_31] : memref<1x1x12xf32, #tpu.memory_space<vmem>>, vector<1x1x12xf32>
    %78 = vector.shape_cast %77 : vector<1x1x12xf32> to vector<1x12xf32>
    %79 = vector.shape_cast %76 : vector<1x12xf32> to vector<1x1x12xf32>
    tpu.vector_store %arg6[%c0_29, %c0_30, %c0_31], %79 {strides = array<i32>} : memref<1x1x12xf32, #tpu.memory_space<vmem>>, vector<1x1x12xf32>,
    return
  }
  func.func @transform_0(%arg0: i32) -> (i32, i32, i32) {
    %c0_i32 = arith.constant 0 : i32
    %c0_i32_0 = arith.constant 0 : i32
    %c0_i32_1 = arith.constant 0 : i32
    return %arg0, %c0_i32, %c0_i32_0 : i32, i32, i32
  }
  func.func @transform_1(%arg0: i32) -> (i32, i32, i32) {
    %c0_i32 = arith.constant 0 : i32
    %c0_i32_0 = arith.constant 0 : i32
    %c0_i32_1 = arith.constant 0 : i32
    return %arg0, %c0_i32, %c0_i32_0 : i32, i32, i32
  }
  func.func @transform_2(%arg0: i32) -> (i32, i32) {
    %c0_i32 = arith.constant 0 : i32
    %c0_i32_0 = arith.constant 0 : i32
    %c0_i32_1 = arith.constant 0 : i32
    return %c0_i32, %c0_i32_0 : i32, i32
  }
  func.func @transform_3(%arg0: i32) -> (i32, i32) {
    %c0_i32 = arith.constant 0 : i32
    %c0_i32_0 = arith.constant 0 : i32
    %c0_i32_1 = arith.constant 0 : i32
    return %c0_i32, %c0_i32_0 : i32, i32
  }
  func.func @transform_4(%arg0: i32) -> (i32, i32, i32) {
    %c0_i32 = arith.constant 0 : i32
    %c0_i32_0 = arith.constant 0 : i32
    %c0_i32_1 = arith.constant 0 : i32
    return %arg0, %c0_i32, %c0_i32_0 : i32, i32, i32
  }
  func.func @transform_5(%arg0: i32) -> (i32, i32, i32) {
    %c0_i32 = arith.constant 0 : i32
    %c0_i32_0 = arith.constant 0 : i32
    %c0_i32_1 = arith.constant 0 : i32
    return %arg0, %c0_i32, %c0_i32_0 : i32, i32, i32
  }
}

</mosaic_0001>

<bundles_post_ra>
// kernel: factorized_importance_batched.1
= control target key start
LH: loop header
LB: loop body
LE: loop exit
PB: predicated region body
PF: predicated region fallthrough
CT: control target
= control target key end

     0   :  { %11 = vsyncpa [#allocation3], 0  ;;  %vm27_vm0 = vcmask 261120   ;;  %v587_v1 = vmov 0.0   ;;  %vm588_vm1 = vmmov 0   ;;  %v589_v6 = vmov 0.0|0.0   ;;  %s715_s0 = inlined_call_operand.vmem [shape: f32[1,16,32], index: 0, kind: input, shape index: {}]   ;;  %s716_s1 = inlined_call_operand.vmem [shape: f32[1,12,32], index: 1, kind: input, shape index: {}]   ;;  %s717_s2 = inlined_call_operand.vmem [shape: f32[8,32], index: 2, kind: input, shape index: {}]   ;;  %s718_s3 = inlined_call_operand.vmem [shape: f32[6,32], index: 3, kind: input, shape index: {}]   ;;  %s719_s4 = inlined_call_operand.hbm [shape: f32[1,1,16], index: 4, kind: output, shape index: {0}]   ;;  %s720_s5 = inlined_call_operand.hbm [shape: f32[1,1,12], index: 5, kind: output, shape index: {1}]  }
   0x1   :  { %v26_v0 = vld [vmem:[%s718_s3] sm:$0x3f]  ;;  %507 = vmatprep.subr.mxu1 %v587_v1  ;;  %509 = vmatprep.mubr.msk.f32.mxu1 %vm588_vm1, %v587_v1  ;;  %v22_v3 = vld [vmem:[%s715_s0 + $0x8] sm:$0xff]  ;;  %vm637_vm2 = vmpackc.low %vm27_vm0, %vm27_vm0 }
   0x2   :  { %v21_v2 = vld [vmem:[%s715_s0] sm:$0xff]  ;;  %508 = vmatpush3.xpose.msk.msra.mxu1 %vm27_vm0, %v26_v0  ;;  %524 = vmatprep.subr.bf16.mxu0 %v589_v6 }
   0x3   :  { %v25_v5 = vld [vmem:[%s717_s2] sm:$0xff]  ;;  %v525_v7 = vpack.c.bf16 %v22_v3, %v21_v2 }
   0x4   :  { %12 = vsyncpa [#allocation5], 0  ;;  %504 = vmatprep.mubr.msk.f32.mxu0 %vm588_vm1, %v587_v1  ;;  %528 = vmatprep.subr.bf16.mxu1 %v589_v6  ;;  %v23_v8 = vld [vmem:[%s716_s1] sm:$0xff]  ;;  %v24_v9 = vld [vmem:[%s716_s1 + $0x8] sm:$0xf]  ;;  %vm276_vm3 = vcmask 48128   ;;  %v280_v17 = vlaneseq }
   0x5   :  { %527 = vmatpush3.bf16.xpose.msk.msra.mxu0 %vm637_vm2, %v525_v7  ;;  %510 = vmatmul.mubr.msk.f32.vlgmr.msra.gmra.mrb[0].mxu1 %vm27_vm0, %v25_v5  ;;  %v529_v10 = vpack.c.bf16 %v24_v9, %v23_v8  ;;  %vm256_vm10 = vcmask 130048   ;;  %vm266_vm12 = vcmask 95232   ;;  %vm433_vm14 = vcmask 46080   ;;  %s591_s1 = smov [#allocation4]  }
   0x6   :  { %519 = vmatprep.subr.mxu0 %v587_v1  ;;  %516 = vmatprep.mubr.msk.f32.mxu1 %vm588_vm1, %v587_v1  ;;  %v309_v20 = vshrl.u32 %v280_v17, 7  ;;  %v281_v34 = vand.u32 127, %v280_v17  ;;  %vm328_vm15 = vcmask 1045504   ;;  %s465_s27 = sshll.u32 %s591_s1, 4  ;;  %s466_s27 = int_to_ptr.vmem [resolvable:$true] %s465_s27 }
   0x7   :  { %531 = vmatpush3.bf16.xpose.msk.msra.mxu1 %vm637_vm2, %v529_v10  ;;  %vm447_vm2 = vcmask 90112   ;;  %s539_s28 = scalar_lea.vmem %s466_s27, 16  ;;  %s543_s29 = scalar_lea.vmem %s466_s27, 32 }
   0x8   :  { %vm429_vm13 = vcmp.eq.s32.totalorder %v309_v20, %v281_v34  ;;  %p540_p0 = scmp.ne.s32.totalorder %s466_s27, %s539_s28  ;;  %p544_p1 = scmp.lt.s32.totalorder %s466_s27, %s466_s27 }
   0x9   :  { %v489_v56 = vsel %vm429_vm13, 1.0, %v587_v1  ;;  %p545_p2 = scmp.lt.s32.totalorder %s543_s29, %s539_s28 }
   0xb   :  { %p546_p3 = por %p545_p2, %p544_p1 }
   0xc   :  { %505 = vmatmul.mubr.msk.f32.vlgmr.msra.gmra.mrb[0].mxu0 %vm27_vm0, %v25_v5 }
   0xd   :  { %521 = vmatprep.mubr.msk.f32.mxu0 %vm588_vm1, %v587_v1  ;;  %p547_p4 = pnand %p546_p3, %p540_p0 }
   0xe   :  { %517 = vmatmul.mubr.msk.f32.vlgmr.msra.gmra.mrb[2].mxu1 %vm27_vm0, %v26_v0 }
  0xd8   :  { %v176_v11 = vpop.f32.mrb[0].mxu1 }
  0xd9   :  { %v511_v12 = vpop.f32.mrb[1].mxu1  ;;  %v277_v13 = vsel %vm276_vm3, %v176_v11, -inf }
  0xda   :  { %278 = vmax.xlane.f32.xlu0 %v277_v13  ;;  %v302_v14 = vrot.slane %v277_v13, 4 }
  0xdc   :  { %v303_v15 = vmax.f32 %v277_v13, %v302_v14 }
  0xde   :  { %v304_v16 = vrot.slane %v303_v15, 2 }
  0xdf   :  { %v667_v27 = vpop.f32.mrb[0].mxu0 }
  0xe0   :  { %v305_v18 = vmax.f32 %v303_v15, %v304_v16  ;;  %v506_v29 = vpop.f32.mrb[1].mxu0  ;;  %v675_v40 = vsel %vm256_vm10, %v667_v27, -inf }
  0xe1   :  { %v252_v32 = vpop.f32.mrb[2].mxu1 }
  0xe2   :  { %v306_v19 = vrot.slane %v305_v18, 1  ;;  %v518_v33 = vpop.f32.mrb[3].mxu1  ;;  %v267_v48 = vsel %vm266_vm12, %v252_v32, -inf }
  0xe3   :  { %v268_v61 = vrot.slane %v267_v48, 4 }
  0xe4   :  { %v307_v21 = vmax.f32 %v305_v18, %v306_v19 }
  0xe5   :  { %v269_v2 = vmax.f32 %v267_v48, %v268_v61 }
  0xe6   :  { %vm310_vm4 = vcmp.eq.f32.partialorder %v176_v11, %v307_v21 }
  0xe7   :  { %v311_v22 = vsel %vm310_vm4, %v309_v20, 8  ;;  %v270_v5 = vrot.slane %v269_v2, 2 }
  0xe8   :  { %v312_v23 = vsel %vm276_vm3, %v311_v22, 2147483647 }
  0xe9   :  { %v313_v24 = vrot.slane %v312_v23, 4  ;;  %v271_v7 = vmax.f32 %v269_v2, %v270_v5 }
  0xeb   :  { %vm314_vm5 = vcmp.lt.s32.totalorder %v312_v23, %v313_v24  ;;  %v272_v8 = vrot.slane %v271_v7, 1 }
  0xec   :  { %v315_v25 = vsel %vm314_vm5, %v312_v23, %v313_v24 }
  0xed   :  { %v316_v26 = vrot.slane %v315_v25, 2  ;;  %v273_v9 = vmax.f32 %v271_v7, %v272_v8 }
  0xef   :  { %vm317_vm6 = vcmp.lt.s32.totalorder %v315_v25, %v316_v26  ;;  %vm437_vm1 = vcmp.eq.f32.partialorder %v252_v32, %v273_v9 }
  0xf0   :  { %v318_v28 = vsel %vm317_vm6, %v315_v25, %v316_v26 }
  0xf1   :  { %v319_v30 = vrot.slane %v318_v28, 1 }
  0xf3   :  { %vm320_vm7 = vcmp.lt.s32.totalorder %v318_v28, %v319_v30 }
  0xf4   :  { %v321_v31 = vsel %vm320_vm7, %v318_v28, %v319_v30 }
  0xf5   :  { %vm322_vm8 = vcmp.eq.s32.totalorder %v309_v20, %v321_v31 }
  0xf6   :  { %v486_v45 = vsel %vm322_vm8, 1.0, %v587_v1 }
 0x167   :  { %v669_v35 = vpop.xlane.xlu0 %278 }
 0x168   :  { %vm282_vm9 = vcmp.eq.f32.partialorder %v176_v11, %v669_v35 }
 0x169   :  { %v283_v36 = vsel %vm282_vm9, %v281_v34, 6 }
 0x16a   :  { %v284_v37 = vsel %vm276_vm3, %v283_v36, 2147483647 }
 0x16b   :  { %v286_v38 = vshra.s32 %v284_v37, 16  ;;  %v285_v41 = vand.u32 65535, %v284_v37 }
 0x16d   :  { %v288_v39 = vcvt.s32.f32 %v286_v38  ;;  %v287_v43 = vcvt.s32.f32 %v285_v41 }
 0x16f   :  { %289 = vmin.xlane.f32.xlu0 %v288_v39 }
 0x173   :  { %264 = vmax.xlane.f32.xlu0 %v675_v40 }
 0x1fc   :  { %v290_v42 = vpop.xlane.xlu0 %289 }
 0x1fd   :  { %vm291_vm11 = vcmp.eq.f32.partialorder %v288_v39, %v290_v42  ;;  %v296_v60 = vcvt.f32.s32 %v290_v42 }
 0x1fe   :  { %v292_v44 = vsel %vm291_vm11, %v287_v43, inf }
 0x1ff   :  { %293 = vmin.xlane.f32.xlu1 %v292_v44  ;;  %v297_v63 = vshll.u32 %v296_v60, 16 }
 0x200   :  { %v265_v46 = vpop.xlane.xlu0 %264 }
 0x201   :  { %v420_v47 = vmul.f32 %v486_v45, %v265_v46 }
 0x203   :  { %v421_v49 = vsel %vm276_vm3, %v420_v47, 0.0  ;;  %274 = vmax.xlane.f32.xlu1 %v267_v48 }
 0x204   :  { %v422_v50 = vrot.slane %v421_v49, 4 }
 0x206   :  { %v423_v51 = vadd.f32 %v422_v50, %v421_v49 }
 0x208   :  { %v424_v52 = vrot.slane %v423_v51, 2 }
 0x20a   :  { %v425_v53 = vadd.f32 %v424_v52, %v423_v51 }
 0x20c   :  { %v426_v54 = vrot.slane %v425_v53, 1 }
 0x20e   :  { %v427_v55 = vadd.f32 %v426_v54, %v425_v53 }
 0x210   :  { %v428_v57 = vmul.f32 %v427_v55, %v307_v21 }
 0x212   :  { %v432_v58 = vmul.f32 %v489_v56, %v428_v57 }
 0x214   :  { %v434_v59 = vsel %vm433_vm14, %v432_v58, 0.0 }
 0x215   :  { %435 = vadd.xlane.f32.xlu1 %v434_v59 }
 0x28c   :  { %v294_v62 = vpop.xlane.xlu1 %293 }
 0x28d   :  { %v295_v0 = vcvt.f32.s32 %v294_v62 }
 0x28f   :  { %v298_v3 = vadd.s32 %v297_v63, %v295_v0 }
 0x290   :  { %v275_v4 = vpop.xlane.xlu1 %274 }
 0x291   :  { %vm299_vm0 = vcmp.eq.s32.totalorder %v281_v34, %v298_v3  ;;  %520 = vmatpush3.msk.msra.mxu0 %vm328_vm15, %v275_v4 }
 0x292   :  { %v485_v6 = vsel %vm299_vm0, 1.0, %v587_v1  ;;  %v590_v1 = vmov 0  }
 0x293   :  { %522 = vmatmul.mubr.msk.f32.vlgmr.msra.gmra.mrb[2].mxu0 %vm276_vm3, %v485_v6  ;;  %538 = vset.pattern.permute.xlu0 %v590_v1 }
 0x2a2   :  { %v436_v10 = vpop.xlane.xlu1 %435 }
 0x2a3   :  { %v438_v11 = vsel %vm437_vm1, %v436_v10, -inf }
 0x2a4   :  { %v439_v12 = vsel %vm266_vm12, %v438_v11, -inf }
 0x2a5   :  { %v440_v13 = vrot.slane %v439_v12, 4 }
 0x2a7   :  { %v441_v14 = vmax.f32 %v439_v12, %v440_v13 }
 0x2a9   :  { %v442_v15 = vrot.slane %v441_v14, 2 }
 0x2ab   :  { %v443_v16 = vmax.f32 %v441_v14, %v442_v15 }
 0x2ad   :  { %v444_v17 = vrot.slane %v443_v16, 1 }
 0x2af   :  { %v445_v18 = vmax.f32 %v443_v16, %v444_v17 }
 0x2b1   :  { %v446_v19 = vmul.f32 %v445_v18, %v273_v9 }
 0x2b3   :  { %448 = vst.msk [vmem:[#allocation4] sm:$0x1] %vm447_vm2, %v446_v19 }
 0x366   :  { %v398_v20 = vpop.f32.mrb[2].mxu0 }
 0x367   :  { %v402_v21 = vmul.f32 %v398_v20, %v669_v35  ;;  %v523_v22 = vpop.f32.mrb[3].mxu0 }
 0x369   :  { %406 = vperm.xlu0 %538, %v402_v21  }
 0x36a   :  { %550 = shalt.err (!%p547_p4)
}
 0x36b   :  { %s551_s7 = scalar_lea.hbm %s720_s5, 16 }
 0x36c   :  { %p552_p5 = scmp.ne.s32.totalorder %s720_s5, %s551_s7  ;;  %p555_p6 = scmp.lt.u32.totalorder %s551_s7, %s720_s5 }
 0x36e   :  { %p557_p7 = pnand %p555_p6, %p552_p5 }
 0x370   :  { %560 = shalt.err (!%p557_p7)
}
 0x371   :  { %468 = dma.vmem_to_hbm [thread:$0]  %s466_s27, 16, %s720_s5, [#allocation5]   ;;  %v258_v23 = vrot.slane %v675_v40, 4  ;;  %vm418_vm4 = vcmask 122880  }
 0x372   :  { %s592_s5 = smov [#allocation2]  }
 0x373   :  { %v259_v24 = vmax.f32 %v675_v40, %v258_v23  ;;  %s455_s14 = sshll.u32 %s592_s5, 4  ;;  %s456_s14 = int_to_ptr.vmem [resolvable:$true] %s455_s14 }
 0x374   :  { %s561_s15 = scalar_lea.vmem %s456_s14, 16  ;;  %s565_s16 = scalar_lea.vmem %s456_s14, 32 }
 0x375   :  { %v260_v25 = vrot.slane %v259_v24, 2  ;;  %p562_p8 = scmp.ne.s32.totalorder %s456_s14, %s561_s15  ;;  %p566_p9 = scmp.lt.s32.totalorder %s456_s14, %s456_s14 }
 0x376   :  { %p567_p10 = scmp.lt.s32.totalorder %s565_s16, %s561_s15 }
 0x377   :  { %v261_v26 = vmax.f32 %v259_v24, %v260_v25 }
 0x378   :  { %p568_p11 = por %p567_p10, %p566_p9 }
 0x379   :  { %v262_v28 = vrot.slane %v261_v26, 1 }
 0x37a   :  { %p569_p12 = pnand %p568_p11, %p562_p8 }
 0x37b   :  { %v263_v29 = vmax.f32 %v261_v26, %v262_v28 }
 0x37d   :  { %vm403_vm3 = vcmp.eq.f32.partialorder %v667_v27, %v263_v29 }
 0x3e8   :  { %v407_v30 = vpop.permute.xlu0 %406 }
 0x3e9   :  { %v409_v31 = vsel %vm403_vm3, %v407_v30, -inf }
 0x3ea   :  { %v410_v32 = vsel %vm256_vm10, %v409_v31, -inf }
 0x3eb   :  { %v411_v33 = vrot.slane %v410_v32, 4 }
 0x3ed   :  { %v412_v34 = vmax.f32 %v410_v32, %v411_v33 }
 0x3ef   :  { %v413_v35 = vrot.slane %v412_v34, 2 }
 0x3f1   :  { %v414_v36 = vmax.f32 %v412_v34, %v413_v35 }
 0x3f3   :  { %v415_v37 = vrot.slane %v414_v36, 1 }
 0x3f5   :  { %v416_v38 = vmax.f32 %v414_v36, %v415_v37 }
 0x3f7   :  { %v417_v39 = vmul.f32 %v416_v38, %v263_v29 }
 0x3f9   :  { %419 = vst.msk [vmem:[#allocation2] sm:$0x1] %vm418_vm4, %v417_v39 }
 0x3fa   :  { %572 = shalt.err (!%p569_p12)
}
 0x3fb   :  { %s573_s19 = scalar_lea.hbm %s719_s4, 16 }
 0x3fc   :  { %p574_p13 = scmp.ne.s32.totalorder %s719_s4, %s573_s19  ;;  %p577_p0 = scmp.lt.u32.totalorder %s573_s19, %s719_s4 }
 0x3fe   :  { %p579_p1 = pnand %p577_p0, %p574_p13 }
 0x400   :  { %582 = shalt.err (!%p579_p1)
}
 0x401   :  { %458 = dma.vmem_to_hbm [thread:$0]  %s456_s14, 16, %s719_s4, [#allocation3]  }
 0x402   :  { %583 = dma.done.wait [#allocation3], 16  }
 0x403   :  { %584 = vsyncadd [#allocation3], 4294967280 }
 0x404   :  { %585 = dma.done.wait [#allocation5], 16  }
 0x405   :  { %586 = vsyncadd [#allocation5], 4294967280 }
 0x406   :  { %475 = vsyncpa [#allocation3], 1 }
 0x407   :  { %476 = vsyncpa [#allocation5], 1 }

</bundles_post_ra>
